<compile_context>
chip_gen: v5e
topology: v5e:2x2
jax: 0.10.0
libtpu: 0.0.40
codegen_flags: <defaults>
</compile_context>

<pallas_src>
import functools
import math

import jax
import jax.numpy as jnp
from jax import lax
from jax.experimental import pallas as pl
from jax.experimental.pallas import tpu as pltpu


def _flash_attn_kernel(q_ref, k_ref, v_ref, o_ref, m_sc, l_sc, acc_sc, qs_sc, *,
                       scale, mm_dtype, kv_tile, seq_len, mask_keys):
    """One (head-block, q-tile, kv-tile) step of online-softmax attention.

    q_ref: [HB, C, TQ]   k_ref/v_ref: [HB, C, TK]   o_ref: [HB, C, TQ]
    scratch (resident across the innermost kv axis):
      m_sc/l_sc: [HB, 1, TQ] f32, acc_sc: [HB, C, TQ] f32, qs_sc: [HB, C, TQ].
    """
    ki = pl.program_id(2)

    @pl.when(ki == 0)
    def _init():
        m_sc[...] = jnp.full(m_sc.shape, -jnp.inf, dtype=jnp.float32)
        l_sc[...] = jnp.zeros(l_sc.shape, dtype=jnp.float32)
        acc_sc[...] = jnp.zeros(acc_sc.shape, dtype=jnp.float32)
        # Hoisted out of the kv loop: the combined 1/sqrt(C) scale on q
        # (mathematically identical to the reference's C^-1/4 on q and k).
        qs_sc[...] = (q_ref[...] * scale).astype(mm_dtype)

    q = qs_sc[...]                          # [HB, C, TQ], pre-scaled
    k = k_ref[...].astype(mm_dtype)         # [HB, C, TK]
    v = v_ref[...].astype(mm_dtype)         # [HB, C, TK]

    # Key-major logits: s[b, kk, t] = sum_c k[b, c, kk] * q[b, c, t].
    # This keeps the softmax stats lane-major and makes the P.V product the
    # MXU-native [C, TK] x [TK, TQ] form (no per-step transpose of V).
    s = lax.dot_general(
        k, q,
        dimension_numbers=(((1,), (1,)), ((0,), (0,))),
        preferred_element_type=jnp.float32,
    )                                       # [HB, TK, TQ] f32

    if mask_keys:
        key_idx = ki * kv_tile + lax.broadcasted_iota(jnp.int32, s.shape, 1)
        s = jnp.where(key_idx < seq_len, s, -1e30)

    m_prev = m_sc[...]                                        # [HB, 1, TQ]
    m_new = jnp.maximum(m_prev, jnp.max(s, axis=1, keepdims=True))
    alpha = jnp.exp(m_prev - m_new)                           # [HB, 1, TQ]
    p = jnp.exp(s - m_new)                                    # [HB, TK, TQ] f32

    l_sc[...] = alpha * l_sc[...] + jnp.sum(p, axis=1, keepdims=True)

    # pv[b, c, t] = sum_kk v[b, c, kk] * p[b, kk, t]  -> already output layout.
    pv = lax.dot_general(
        v, p.astype(mm_dtype),
        dimension_numbers=(((2,), (1,)), ((0,), (0,))),
        preferred_element_type=jnp.float32,
    )                                       # [HB, C, TQ] f32
    acc_sc[...] = alpha * acc_sc[...] + pv
    m_sc[...] = m_new

    @pl.when(ki == pl.num_programs(2) - 1)
    def _finalize():
        l = l_sc[...]
        inv = pl.reciprocal(l, approx=True)       # EUP slot
        inv = inv * (2.0 - l * inv)               # one Newton step -> ~f32 exact
        o_ref[...] = (acc_sc[...] * inv).astype(o_ref.dtype)


def _vmem_budget():
    """(compiler vmem limit, per-grid-step working-set budget) in bytes,
    derived from the actual part's VMEM capacity (128 MiB v5e/v6e, 64 MiB v7x)."""
    capacity = 64 * 1024 * 1024                  # conservative fallback (v7x)
    try:
        capacity = int(pltpu.get_tpu_info().vmem_capacity_bytes)
    except Exception:
        pass
    limit = max(32 * 1024 * 1024, min(int(0.75 * capacity), 100 * 1024 * 1024))
    budget = int(0.40 * limit)
    return limit, budget


def _pick_tile(total: int, target: int) -> int:
    """Largest multiple of 128 dividing `total` (a lane multiple) and <= target."""
    assert total % 128 == 0
    best = 128
    cand = 128
    limit = min(total, max(target, 128))
    while cand <= limit:
        if total % cand == 0:
            best = cand
        cand += 128
    return best


def _per_head_bytes(ch, tq, tk, itemsize, mm_itemsize):
    """Working-set bytes for ONE head at the given tiles (double-buffered I/O
    blocks + scratch + the live f32 logits / probability intermediates)."""
    io_blocks = 4 * ch * (tq + tk) * itemsize     # 2-buffered q, o, k, v tiles
    acc = ch * tq * 4                             # f32 output accumulator
    qs = ch * tq * mm_itemsize                    # pre-scaled q scratch
    ml = 2 * 8 * tq * 4                           # m / l (sublane-padded)
    live = tq * tk * (8 + mm_itemsize)            # s + p (f32) + cast p
    return io_blocks + acc + qs + ml + live


def _pick_head_block(B, n_q, per_head_bytes, budget_bytes, max_heads=16):
    """Heads per grid step: largest divisor of B whose working set fits the
    budget, while keeping >= 2 parallel grid steps (v7x has 2 TensorCores)."""
    cap = max(1, min(max_heads, B, budget_bytes // max(per_head_bytes, 1)))
    if n_q == 1 and B >= 2:
        cap = min(cap, max(1, B // 2))
    hb = 1
    for cand in range(1, int(cap) + 1):
        if B % cand == 0:
            hb = cand
    return hb


def qkv_attention_legacy(qkv, n_heads, *, q_tile=None, kv_tile=None,
                         head_block=None, compute_dtype=None, kv_buffers=None):
    """Pallas TPU implementation of QKVAttentionLegacy.forward.

    :param qkv: [N, H*3*C, T] array of concatenated Qs, Ks, Vs (channel-major).
    :param compute_dtype: optional dtype for the MXU operands (e.g. bf16 on
        v6e/v7x for f32 inputs); default keeps the input dtype exactly.
    :param kv_buffers: optional pipeline depth for the K/V streams (e.g. 3 on
        v5e if DMA is exposed); default leaves the standard double buffering.
    :return: [N, H*C, T] array after attention.
    """
    bs, width, length = qkv.shape
    assert width % (3 * n_heads) == 0
    ch = width // (3 * n_heads)
    B = bs * n_heads

    in_dtype = jnp.dtype(qkv.dtype)
    itemsize = in_dtype.itemsize
    mm_dtype = in_dtype if compute_dtype is None else jnp.dtype(compute_dtype)
    mm_itemsize = jnp.dtype(mm_dtype).itemsize

    # Pad the sequence axis to a lane multiple; padded keys are masked to -inf
    # inside the kernel, padded query columns are sliced off at the end.
    t_pad = -(-length // 128) * 128
    if t_pad != length:
        qkv = jnp.pad(qkv, ((0, 0), (0, 0), (0, t_pad - length)))
    mask_keys = t_pad != length

    # Zero-copy view [N, H*3*C, Tp] -> [B, 3, C, Tp]; the q/k/v planes are
    # selected purely by BlockSpec index_maps (no XLA-side slicing).
    qkv_r = qkv.reshape(B, 3, ch, t_pad)

    vmem_limit, budget = _vmem_budget()
    big_vmem = budget >= 32 * 1024 * 1024

    tq = q_tile if q_tile is not None else _pick_tile(t_pad, 512 if big_vmem else 256)
    if kv_tile is not None:
        tk = kv_tile
    elif _per_head_bytes(ch, tq, t_pad, itemsize, mm_itemsize) <= budget // 2:
        # K/V (+ the f32 logits row) for the full sequence fit comfortably:
        # take tk = Tp so n_k == 1 and K/V are fetched once per head-block.
        tk = t_pad
    else:
        tk = _pick_tile(t_pad, 1024 if big_vmem else 512)

    # Shrink tiles until a single head fits inside the working-set budget.
    while (_per_head_bytes(ch, tq, tk, itemsize, mm_itemsize) > budget
           and max(tq, tk) > 128):
        if tk >= tq:
            tk = _pick_tile(t_pad, max(tk // 2, 128))
        else:
            tq = _pick_tile(t_pad, max(tq // 2, 128))

    assert t_pad % tq == 0 and t_pad % tk == 0, (tq, tk, t_pad)
    n_q, n_k = t_pad // tq, t_pad // tk

    per_head = _per_head_bytes(ch, tq, tk, itemsize, mm_itemsize)
    hb = head_block if head_block is not None else _pick_head_block(B, n_q, per_head, budget)
    assert B % hb == 0
    n_b = B // hb

    scale = 1.0 / math.sqrt(ch)   # == the reference's C^-1/4 applied to q and k

    kernel = functools.partial(
        _flash_attn_kernel, scale=scale, mm_dtype=mm_dtype,
        kv_tile=tk, seq_len=length, mask_keys=mask_keys)

    kv_kwargs = {}
    if kv_buffers is not None:
        kv_kwargs = dict(pipeline_mode=pl.Buffered(kv_buffers))

    cost = pl.CostEstimate(
        flops=int(4 * B * ch * t_pad * t_pad),
        transcendentals=int(B * t_pad * t_pad),
        bytes_accessed=int(itemsize * B * ch * t_pad
                           * (2 + (2 if n_k == 1 else 2 * n_q))),
    )

    out = pl.pallas_call(
        kernel,
        out_shape=jax.ShapeDtypeStruct((B, ch, t_pad), qkv.dtype),
        grid_spec=pltpu.PrefetchScalarGridSpec(
            num_scalar_prefetch=0,
            grid=(n_b, n_q, n_k),
            in_specs=[
                pl.BlockSpec((hb, None, ch, tq), lambda b, qi, ki: (b, 0, 0, qi)),
                pl.BlockSpec((hb, None, ch, tk), lambda b, qi, ki: (b, 1, 0, ki),
                             **kv_kwargs),
                pl.BlockSpec((hb, None, ch, tk), lambda b, qi, ki: (b, 2, 0, ki),
                             **kv_kwargs),
            ],
            out_specs=pl.BlockSpec((hb, ch, tq), lambda b, qi, ki: (b, 0, qi)),
            scratch_shapes=[
                pltpu.VMEM((hb, 1, tq), jnp.float32),     # running max
                pltpu.VMEM((hb, 1, tq), jnp.float32),     # running denominator
                pltpu.VMEM((hb, ch, tq), jnp.float32),    # output accumulator
                pltpu.VMEM((hb, ch, tq), mm_dtype),       # pre-scaled q
            ],
        ),
        compiler_params=pltpu.CompilerParams(
            dimension_semantics=("parallel", "parallel", "arbitrary"),
            vmem_limit_bytes=vmem_limit,
        ),
        cost_estimate=cost,
    )(qkv_r, qkv_r, qkv_r)

    if t_pad != length:
        out = out[:, :, :length]
    return out.reshape(bs, n_heads * ch, length)


def _reference(qkv, n_heads):
    """Pure-JAX reference mirroring the PyTorch module, for sanity checking."""
    bs, width, length = qkv.shape
    ch = width // (3 * n_heads)
    qkv_r = qkv.reshape(bs * n_heads, 3 * ch, length)
    q, k, v = qkv_r[:, :ch], qkv_r[:, ch:2 * ch], qkv_r[:, 2 * ch:]
    scale = 1.0 / math.sqrt(math.sqrt(ch))
    w = jnp.einsum("bct,bcs->bts", q * scale, k * scale)
    w = jax.nn.softmax(w.astype(jnp.float32), axis=-1).astype(w.dtype)
    a = jnp.einsum("bts,bcs->bct", w, v)
    return a.reshape(bs, -1, length)


if __name__ == "__main__":
    k1, k2, k3 = jax.random.split(jax.random.PRNGKey(0), 3)

    # Case 1: tiny, non-128-aligned T (exercises the pad + key-mask path).
    N, H, C, T = 2, 2, 8, 16
    qkv1 = jax.random.normal(k1, (N, H * 3 * C, T), dtype=jnp.float32)
    out1 = jax.block_until_ready(qkv_attention_legacy(qkv1, n_heads=H))
    ref1 = _reference(qkv1, n_heads=H)
    assert out1.shape == (N, H * C, T)
    assert jnp.allclose(out1, ref1, atol=2e-3, rtol=2e-3), \
        float(jnp.max(jnp.abs(out1 - ref1)))

    # Case 2: aligned T with forced tiling (exercises the online-softmax
    # accumulation across kv steps and head batching).
    N, H, C, T = 2, 2, 16, 256
    qkv2 = jax.random.normal(k2, (N, H * 3 * C, T), dtype=jnp.float32)
    out2 = jax.block_until_ready(
        qkv_attention_legacy(qkv2, n_heads=H, q_tile=128, kv_tile=128))
    ref2 = _reference(qkv2, n_heads=H)
    assert out2.shape == (N, H * C, T)
    assert jnp.allclose(out2, ref2, atol=2e-3, rtol=2e-3), \
        float(jnp.max(jnp.abs(out2 - ref2)))

    # Case 3: bf16, non-aligned T with a multi-step masked kv loop.
    N, H, C, T = 1, 3, 32, 192
    qkv3 = jax.random.normal(k3, (N, H * 3 * C, T), dtype=jnp.bfloat16)
    out3 = jax.block_until_ready(
        qkv_attention_legacy(qkv3, n_heads=H, q_tile=128, kv_tile=128))
    ref3 = _reference(qkv3, n_heads=H)
    assert out3.shape == (N, H * C, T)
    err3 = jnp.max(jnp.abs(out3.astype(jnp.float32) - ref3.astype(jnp.float32)))
    assert jnp.allclose(out3.astype(jnp.float32), ref3.astype(jnp.float32),
                        atol=3e-2, rtol=3e-2), float(err3)

    print("KERNEL_OK")
</pallas_src>

<mosaic_0001>
module attributes {stable_mosaic.version = 11 : i64} {
  func.func @_flash_attn_kernel(%arg0: i32, %arg1: i32, %arg2: i32, %arg3: memref<2x1x8x128xf32, #tpu.memory_space<vmem>>, %arg4: memref<2x1x8x128xf32, #tpu.memory_space<vmem>>, %arg5: memref<2x1x8x128xf32, #tpu.memory_space<vmem>>, %arg6: memref<2x8x128xf32, #tpu.memory_space<vmem>>, %arg7: memref<2x1x128xf32, #tpu.memory_space<vmem>>, %arg8: memref<2x1x128xf32, #tpu.memory_space<vmem>>, %arg9: memref<2x8x128xf32, #tpu.memory_space<vmem>>, %arg10: memref<2x8x128xf32, #tpu.memory_space<vmem>>) attributes {dimension_semantics = [#tpu.dimension_semantics<parallel>, #tpu.dimension_semantics<parallel>, #tpu.dimension_semantics<arbitrary>], iteration_bounds = array<i64: 2, 1, 1>, scalar_prefetch = 0 : i64, scratch_operands = 4 : i64, tpu.core_type = #tpu.core_type<tc>, window_params = [{transform_indices = @transform_0, window_bounds = array<i64: 2, 1, 8, 128>}, {transform_indices = @transform_1, window_bounds = array<i64: 2, 1, 8, 128>}, {transform_indices = @transform_2, window_bounds = array<i64: 2, 1, 8, 128>}, {transform_indices = @transform_3, window_bounds = array<i64: 2, 8, 128>}]} {
    %c0_i32 = arith.constant 0 : i32
    %0 = arith.cmpi eq, %arg2, %c0_i32 : i32
    %1 = arith.extui %0 : i1 to i32
    %c0_i32_0 = arith.constant 0 : i32
    %2 = arith.cmpi ne, %1, %c0_i32_0 : i32
    scf.if %2 {
      %cst_35 = arith.constant 0xFF800000 : f32
      %42 = vector.broadcast %cst_35 : f32 to vector<2x1x128xf32>
      %c0_36 = arith.constant 0 : index
      %c0_37 = arith.constant 0 : index
      %c0_38 = arith.constant 0 : index
      %43 = vector.load %arg7[%c0_36, %c0_37, %c0_38] : memref<2x1x128xf32, #tpu.memory_space<vmem>>, vector<2x1x128xf32>
      tpu.vector_store %arg7[%c0_36, %c0_37, %c0_38], %42 {strides = array<i32>} : memref<2x1x128xf32, #tpu.memory_space<vmem>>, vector<2x1x128xf32>,
      %cst_39 = arith.constant 0.000000e+00 : f32
      %44 = vector.broadcast %cst_39 : f32 to vector<2x1x128xf32>
      %c0_40 = arith.constant 0 : index
      %c0_41 = arith.constant 0 : index
      %c0_42 = arith.constant 0 : index
      %45 = vector.load %arg8[%c0_40, %c0_41, %c0_42] : memref<2x1x128xf32, #tpu.memory_space<vmem>>, vector<2x1x128xf32>
      tpu.vector_store %arg8[%c0_40, %c0_41, %c0_42], %44 {strides = array<i32>} : memref<2x1x128xf32, #tpu.memory_space<vmem>>, vector<2x1x128xf32>,
      %cst_43 = arith.constant 0.000000e+00 : f32
      %46 = vector.broadcast %cst_43 : f32 to vector<2x8x128xf32>
      %c0_44 = arith.constant 0 : index
      %c0_45 = arith.constant 0 : index
      %c0_46 = arith.constant 0 : index
      %47 = vector.load %arg9[%c0_44, %c0_45, %c0_46] : memref<2x8x128xf32, #tpu.memory_space<vmem>>, vector<2x8x128xf32>
      tpu.vector_store %arg9[%c0_44, %c0_45, %c0_46], %46 {strides = array<i32>} : memref<2x8x128xf32, #tpu.memory_space<vmem>>, vector<2x8x128xf32>,
      %c0_47 = arith.constant 0 : index
      %c0_48 = arith.constant 0 : index
      %c0_49 = arith.constant 0 : index
      %c0_50 = arith.constant 0 : index
      %48 = vector.load %arg3[%c0_47, %c0_48, %c0_49, %c0_50] : memref<2x1x8x128xf32, #tpu.memory_space<vmem>>, vector<2x1x8x128xf32>
      %49 = vector.shape_cast %48 : vector<2x1x8x128xf32> to vector<2x8x128xf32>
      %cst_51 = arith.constant 0.353553385 : f32
      %50 = vector.broadcast %cst_51 : f32 to vector<2x8x128xf32>
      %51 = arith.mulf %49, %50 : vector<2x8x128xf32>
      %c0_52 = arith.constant 0 : index
      %c0_53 = arith.constant 0 : index
      %c0_54 = arith.constant 0 : index
      %52 = vector.load %arg10[%c0_52, %c0_53, %c0_54] : memref<2x8x128xf32, #tpu.memory_space<vmem>>, vector<2x8x128xf32>
      tpu.vector_store %arg10[%c0_52, %c0_53, %c0_54], %51 {strides = array<i32>} : memref<2x8x128xf32, #tpu.memory_space<vmem>>, vector<2x8x128xf32>,
    } else {
    }
    %c0 = arith.constant 0 : index
    %c0_1 = arith.constant 0 : index
    %c0_2 = arith.constant 0 : index
    %3 = vector.load %arg10[%c0, %c0_1, %c0_2] : memref<2x8x128xf32, #tpu.memory_space<vmem>>, vector<2x8x128xf32>
    %c0_3 = arith.constant 0 : index
    %c0_4 = arith.constant 0 : index
    %c0_5 = arith.constant 0 : index
    %c0_6 = arith.constant 0 : index
    %4 = vector.load %arg4[%c0_3, %c0_4, %c0_5, %c0_6] : memref<2x1x8x128xf32, #tpu.memory_space<vmem>>, vector<2x1x8x128xf32>
    %5 = vector.shape_cast %4 : vector<2x1x8x128xf32> to vector<2x8x128xf32>
    %c0_7 = arith.constant 0 : index
    %c0_8 = arith.constant 0 : index
    %c0_9 = arith.constant 0 : index
    %c0_10 = arith.constant 0 : index
    %6 = vector.load %arg5[%c0_7, %c0_8, %c0_9, %c0_10] : memref<2x1x8x128xf32, #tpu.memory_space<vmem>>, vector<2x1x8x128xf32>
    %7 = vector.shape_cast %6 : vector<2x1x8x128xf32> to vector<2x8x128xf32>
    %cst = arith.constant dense<0.000000e+00> : vector<2x128x128xf32>
    %8 = tpu.matmul %5, %3, %cst {dimension_numbers = #tpu.dot_dimension_numbers<[1], [1], [2], [2], [0, 0, 0, 2, 1, 2], [0], [0]>} : vector<2x8x128xf32>, vector<2x8x128xf32>, vector<2x128x128xf32> -> vector<2x128x128xf32>
    %c128_i32 = arith.constant 128 : i32
    %9 = arith.muli %arg2, %c128_i32 : i32
    %10 = tpu.iota {dimensions = array<i32: 1>} : vector<2x128x128xi32>
    %11 = vector.broadcast %9 : i32 to vector<2x128x128xi32>
    %12 = arith.addi %11, %10 : vector<2x128x128xi32>
    %c16_i32 = arith.constant 16 : i32
    %13 = vector.broadcast %c16_i32 : i32 to vector<2x128x128xi32>
    %14 = arith.cmpi slt, %12, %13 : vector<2x128x128xi32>
    %cst_11 = arith.constant -1.000000e+30 : f32
    %15 = vector.broadcast %cst_11 : f32 to vector<2x128x128xf32>
    %16 = arith.select %14, %8, %15 : vector<2x128x128xi1>, vector<2x128x128xf32>
    %c0_12 = arith.constant 0 : index
    %c0_13 = arith.constant 0 : index
    %c0_14 = arith.constant 0 : index
    %17 = vector.load %arg7[%c0_12, %c0_13, %c0_14] : memref<2x1x128xf32, #tpu.memory_space<vmem>>, vector<2x1x128xf32>
    %cst_15 = arith.constant dense<0xFF800000> : vector<2x128xf32>
    %18 = vector.multi_reduction <maximumf>, %16, %cst_15 [1] : vector<2x128x128xf32> to vector<2x128xf32>
    %19 = vector.shape_cast %18 : vector<2x128xf32> to vector<2x1x128xf32>
    %20 = arith.maximumf %17, %19 : vector<2x1x128xf32>
    %21 = arith.subf %17, %20 : vector<2x1x128xf32>
    %22 = math.exp %21 : vector<2x1x128xf32>
    %23 = vector.broadcast %20 : vector<2x1x128xf32> to vector<2x128x128xf32>
    %24 = arith.subf %16, %23 : vector<2x128x128xf32>
    %25 = math.exp %24 : vector<2x128x128xf32>
    %c0_16 = arith.constant 0 : index
    %c0_17 = arith.constant 0 : index
    %c0_18 = arith.constant 0 : index
    %26 = vector.load %arg8[%c0_16, %c0_17, %c0_18] : memref<2x1x128xf32, #tpu.memory_space<vmem>>, vector<2x1x128xf32>
    %27 = arith.mulf %22, %26 : vector<2x1x128xf32>
    %cst_19 = arith.constant dense<0.000000e+00> : vector<2x128xf32>
    %28 = vector.multi_reduction <add>, %25, %cst_19 [1] : vector<2x128x128xf32> to vector<2x128xf32>
    %29 = vector.shape_cast %28 : vector<2x128xf32> to vector<2x1x128xf32>
    %30 = arith.addf %27, %29 : vector<2x1x128xf32>
    %c0_20 = arith.constant 0 : index
    %c0_21 = arith.constant 0 : index
    %c0_22 = arith.constant 0 : index
    %31 = vector.load %arg8[%c0_20, %c0_21, %c0_22] : memref<2x1x128xf32, #tpu.memory_space<vmem>>, vector<2x1x128xf32>
    tpu.vector_store %arg8[%c0_20, %c0_21, %c0_22], %30 {strides = array<i32>} : memref<2x1x128xf32, #tpu.memory_space<vmem>>, vector<2x1x128xf32>,
    %cst_23 = arith.constant dense<0.000000e+00> : vector<2x8x128xf32>
    %32 = tpu.matmul %7, %25, %cst_23 {dimension_numbers = #tpu.dot_dimension_numbers<[2], [1], [1], [2], [0, 0, 0, 1, 1, 2], [0], [0]>} : vector<2x8x128xf32>, vector<2x128x128xf32>, vector<2x8x128xf32> -> vector<2x8x128xf32>
    %c0_24 = arith.constant 0 : index
    %c0_25 = arith.constant 0 : index
    %c0_26 = arith.constant 0 : index
    %33 = vector.load %arg9[%c0_24, %c0_25, %c0_26] : memref<2x8x128xf32, #tpu.memory_space<vmem>>, vector<2x8x128xf32>
    %34 = vector.broadcast %22 : vector<2x1x128xf32> to vector<2x8x128xf32>
    %35 = arith.mulf %34, %33 : vector<2x8x128xf32>
    %36 = arith.addf %35, %32 : vector<2x8x128xf32>
    %c0_27 = arith.constant 0 : index
    %c0_28 = arith.constant 0 : index
    %c0_29 = arith.constant 0 : index
    %37 = vector.load %arg9[%c0_27, %c0_28, %c0_29] : memref<2x8x128xf32, #tpu.memory_space<vmem>>, vector<2x8x128xf32>
    tpu.vector_store %arg9[%c0_27, %c0_28, %c0_29], %36 {strides = array<i32>} : memref<2x8x128xf32, #tpu.memory_space<vmem>>, vector<2x8x128xf32>,
    %c0_30 = arith.constant 0 : index
    %c0_31 = arith.constant 0 : index
    %c0_32 = arith.constant 0 : index
    %38 = vector.load %arg7[%c0_30, %c0_31, %c0_32] : memref<2x1x128xf32, #tpu.memory_space<vmem>>, vector<2x1x128xf32>
    tpu.vector_store %arg7[%c0_30, %c0_31, %c0_32], %20 {strides = array<i32>} : memref<2x1x128xf32, #tpu.memory_space<vmem>>, vector<2x1x128xf32>,
    %c0_i32_33 = arith.constant 0 : i32
    %39 = arith.cmpi eq, %arg2, %c0_i32_33 : i32
    %40 = arith.extui %39 : i1 to i32
    %c0_i32_34 = arith.constant 0 : i32
    %41 = arith.cmpi ne, %40, %c0_i32_34 : i32
    scf.if %41 {
      %c0_35 = arith.constant 0 : index
      %c0_36 = arith.constant 0 : index
      %c0_37 = arith.constant 0 : index
      %42 = vector.load %arg8[%c0_35, %c0_36, %c0_37] : memref<2x1x128xf32, #tpu.memory_space<vmem>>, vector<2x1x128xf32>
      %43 = tpu.reciprocal %42 {approx = true} : vector<2x1x128xf32> -> vector<2x1x128xf32>
      %44 = arith.mulf %42, %43 : vector<2x1x128xf32>
      %cst_38 = arith.constant 2.000000e+00 : f32
      %45 = vector.broadcast %cst_38 : f32 to vector<2x1x128xf32>
      %46 = arith.subf %45, %44 : vector<2x1x128xf32>
      %47 = arith.mulf %43, %46 : vector<2x1x128xf32>
      %c0_39 = arith.constant 0 : index
      %c0_40 = arith.constant 0 : index
      %c0_41 = arith.constant 0 : index
      %48 = vector.load %arg9[%c0_39, %c0_40, %c0_41] : memref<2x8x128xf32, #tpu.memory_space<vmem>>, vector<2x8x128xf32>
      %49 = vector.broadcast %47 : vector<2x1x128xf32> to vector<2x8x128xf32>
      %50 = arith.mulf %48, %49 : vector<2x8x128xf32>
      %c0_42 = arith.constant 0 : index
      %c0_43 = arith.constant 0 : index
      %c0_44 = arith.constant 0 : index
      %51 = vector.load %arg6[%c0_42, %c0_43, %c0_44] : memref<2x8x128xf32, #tpu.memory_space<vmem>>, vector<2x8x128xf32>
      tpu.vector_store %arg6[%c0_42, %c0_43, %c0_44], %50 {strides = array<i32>} : memref<2x8x128xf32, #tpu.memory_space<vmem>>, vector<2x8x128xf32>,
    } else {
    }
    return
  }
  func.func @transform_0(%arg0: i32, %arg1: i32, %arg2: i32) -> (i32, i32, i32, i32) {
    %c0_i32 = arith.constant 0 : i32
    %c0_i32_0 = arith.constant 0 : i32
    %c0_i32_1 = arith.constant 0 : i32
    return %arg0, %c0_i32, %c0_i32_0, %arg1 : i32, i32, i32, i32
  }
  func.func @transform_1(%arg0: i32, %arg1: i32, %arg2: i32) -> (i32, i32, i32, i32) {
    %c1_i32 = arith.constant 1 : i32
    %c0_i32 = arith.constant 0 : i32
    %c0_i32_0 = arith.constant 0 : i32
    return %arg0, %c1_i32, %c0_i32, %arg2 : i32, i32, i32, i32
  }
  func.func @transform_2(%arg0: i32, %arg1: i32, %arg2: i32) -> (i32, i32, i32, i32) {
    %c2_i32 = arith.constant 2 : i32
    %c0_i32 = arith.constant 0 : i32
    %c0_i32_0 = arith.constant 0 : i32
    return %arg0, %c2_i32, %c0_i32, %arg2 : i32, i32, i32, i32
  }
  func.func @transform_3(%arg0: i32, %arg1: i32, %arg2: i32) -> (i32, i32, i32) {
    %c0_i32 = arith.constant 0 : i32
    %c0_i32_0 = arith.constant 0 : i32
    return %arg0, %c0_i32, %arg1 : i32, i32, i32
  }
}

</mosaic_0001>

<bundles_post_ra>
// kernel: tpu_custom_call.1
= control target key start
LH: loop header
LB: loop body
LE: loop exit
PB: predicated region body
PF: predicated region fallthrough
CT: control target
= control target key end

     0   :  { %s1725_s0 = inlined_call_operand.hbm [shape: f32[4,3,8,128], index: 0, kind: input, shape index: {}]   ;;  %s1726_s1 = inlined_call_operand.hbm [shape: f32[4,3,8,128], index: 1, kind: input, shape index: {}]   ;;  %s1727_s2 = inlined_call_operand.hbm [shape: f32[4,3,8,128], index: 2, kind: input, shape index: {}]   ;;  %s1728_s3 = inlined_call_operand.hbm [shape: f32[4,8,128], index: 3, kind: output, shape index: {}]  }
   0x1   :  { %1736 = sst [smem:[#allocation23_spill]] %s1726_s1 }
   0x2   :  { %8 = vsyncpa [#allocation7], 0 }
   0x3   :  { %10 = vsyncpa [#allocation7 + $0x1], 0 }
   0x4   :  { %11 = vsyncpa [#allocation10], 0 }
   0x5   :  { %13 = vsyncpa [#allocation10 + $0x1], 0 }
   0x6   :  { %14 = vsyncpa [#allocation8], 0 }
   0x7   :  { %16 = vsyncpa [#allocation8 + $0x1], 0  ;;  %s1508_s12 = smov 0   ;;  %s1510_s13 = smov 0  }
   0x8   :  { %s1512_s14 = smov 0   ;;  %s1514_s15 = smov 0  }
   0x9   :  { %s1516_s16 = smov 0   ;;  %s1518_s17 = smov 0  }
   0xa LB: > { %1737 = sst [smem:[#allocation16_spill]] %s1459_s12  ;;  %s1539_s18 = sadd.s32 4294967295, %s1479_s17   ;;  %s1479_s17 = sphi %s1518_s17, %s22_s17   ;;  %s1475_s16 = sphi %s1516_s16, %s1757_s16   ;;  %s1471_s15 = sphi %s1514_s15, %s1756_s15   ;;  %s1467_s14 = sphi %s1512_s14, %s1755_s14   ;;  %s1463_s13 = sphi %s1510_s13, %s1759_s13   ;;  %s1459_s12 = sphi %s1508_s12, %s1758_s12  }
   0xb   : > { %1738 = sst [smem:[#allocation17_spill]] %s1467_s14  ;;  %s1147_s19 = sadd.s32 4294967294, %s1479_s17  }
   0xc   : > { %1739 = sst [smem:[#allocation18_spill]] %s1475_s16  ;;  %s41_s20 = sadd.s32 1, %s1475_s16 }
   0xd   : > { %1740 = sst [smem:[#allocation19_spill]] %s1479_s17  ;;  %s50_s21 = sadd.s32 1, %s1467_s14 }
   0xe   : > { %p43_p0 = scmp.ge.s32.totalorder %s41_s20, 2  ;;  %p57_p1 = scmp.ne.s32.totalorder %s1467_s14, %s1463_s13 }
   0xf   : > { %p58_p2 = scmp.eq.s32.totalorder %s1479_s17, 0  ;;  %p63_p3 = scmp.ne.s32.totalorder %s1463_s13, %s1459_s12 }
  0x10   : > { %s1761_s20 = smov (%p43_p0, %s41_s20), 0  ;;  %p64_p5 = scmp.eq.s32.totalorder %s1539_s18, 0 }
  0x11   : > { %1741 = sst [smem:[#allocation20_spill]] %s1761_s20  ;;  %p1551_p4 = por %p58_p2, %p57_p1 }
  0x12   : > { %s45_s23 = ssub.s32 %s1475_s16, %s1761_s20  ;;  %p145_p6 = scmp.eq.s32.totalorder %s1539_s18, 1 }
  0x13   : > { %p48_p7 = scmp.eq.s32.totalorder %s45_s23, 0  ;;  %p1559_p8 = por %p64_p5, %p63_p3 }
  0x14   : > { %p1563_p9 = por %p145_p6, %p57_p1  ;;  %p151_p10 = scmp.eq.s32.totalorder %s1147_s19, 1 }
  0x15   : > { %s1568_s26 = scalar_select %p48_p7, %s1467_s14, %s50_s21  }
  0x16   : > { %p1570_p11 = por %p151_p10, %p63_p3  ;;  %p1149_p12 = scmp.ge.s32.totalorder %s1479_s17, 2 }
  0x17   : > { %1745 = sst [smem:[#allocation21_spill]] %s1568_s26  ;;  %p1226_p13 = scmp.lt.s32.totalorder %s1479_s17, 2 }
  0x18   : > { %s1746_s27 = scalar_select %p1570_p11, 1, 0 }
  0x19   : > { %s171_s28 = sand.u32 1, %s1467_s14   ;;  %s1580_s30 = smul.u32 48, %s1475_s16 }
  0x1a   : > { %1747 = sst [smem:[#allocation22_spill]] %s1746_s27  ;;  %s1577_s29 = sshll.u32 %s171_s28, 4 }
  0x1b   : > { %p1584_p0 = pnand %p1226_p13, %p1551_p4  ;;  %s195_s5 = sand.u32 1, %s1479_s17  }
  0x1c   : > { %s1749_s1 = sld [smem:[#allocation23_spill]]  ;;  %s199_s9 = scalar_lea.vmem [#allocation9], %s1577_s29 }
  0x1d   : > { %s210_s10 = sshll.u32 %s199_s9, 4  ;;  %p1158_p1 = scmp.ge.s32.totalorder %s1479_s17, 1  ;;  %s211_s10 = int_to_ptr.vmem [resolvable:$true] %s210_s10 }
  0x1e   : > { %p243_p2 = scmp.lt.s32.totalorder %s1479_s17, 3  ;;  %s196_s21 = scalar_lea.sflag [#allocation10], %s195_s5 }
  0x1f   : > { %s1481_s22 = smov 384   ;;  %s1482_s23 = smov 128  }
  0x20   : > { %s1483_s20 = smov 8   ;;  %p1598_p3 = pnand %p1158_p1, %p243_p2 }
  0x21   : > { %s182_s9 = scalar_lea.hbm %s1725_s0, %s1580_s30  ;;  %s172_s5 = scalar_lea.sflag [#allocation7], %s171_s28 }
  0x22   : > { %s1052_s8 = scalar_lea.hbm %s1749_s1, %s1580_s30  ;;  %s175_s1 = scalar_lea.vmem [#allocation6], %s1577_s29 }
  0x23   : > { %s1053_s11 = scalar_lea.hbm %s1052_s8, 8  ;;  %s185_s16 = sshll.u32 %s175_s1, 4  ;;  %s186_s16 = int_to_ptr.vmem [resolvable:$true] %s185_s16 }
  0x24   : > { %s208_s19 = sshll.u32 %s1053_s11, 4  ;;  %s183_s11 = sshll.u32 %s182_s9, 4  ;;  %s209_s19 = int_to_ptr.hbm [resolvable:$true] %s208_s19  ;;  %s184_s11 = int_to_ptr.hbm [resolvable:$true] %s183_s11 }
  0x25   : > { %1218 = dma.hbm_to_vmem [thread:$0]  (!%p1584_p0), %s209_s19, 256, %s211_s10, %s196_s21, %s1481_s22, %s1482_s23, %s1483_s20  }
  0x26   : > { %1215 = dma.hbm_to_vmem [thread:$0]  (!%p1584_p0), %s184_s11, 256, %s186_s16, %s172_s5, %s1481_s22, %s1482_s23, %s1483_s20  }
  0x27   : > { %s1060_s10 = scalar_lea.hbm %s1727_s2, %s1580_s30  ;;  %s224_s17 = scalar_lea.vmem [#allocation11], %s1577_s29 }
  0x28   : > { %s1061_s19 = scalar_lea.hbm %s1060_s10, 16  ;;  %s235_s27 = sshll.u32 %s224_s17, 4  ;;  %s236_s27 = int_to_ptr.vmem [resolvable:$true] %s235_s27 }
  0x29   : > { %s233_s12 = sshll.u32 %s1061_s19, 4  ;;  %247 = sbr.rel (%p1598_p3) target bundleno = 693 (0x2b5), region = 32  ;;  %s234_s12 = int_to_ptr.hbm [resolvable:$true] %s233_s12 }
  0x2a   : > { %1221 = dma.hbm_to_vmem [thread:$0]  (!%p1584_p0), %s234_s12, 256, %s236_s27, %s196_s21, %s1481_s22, %s1482_s23, %s1483_s20  }
  0x2b   : > { %s1619_s1 = sand.u32 (!%p1598_p3), 1, %s1463_s13  }
  0x2c   : > { %s1622_s16 = sshll.u32 (!%p1598_p3), %s1619_s1, 4  ;;  %s250_s14 = scalar_lea.sflag (!%p1598_p3), [#allocation7], %s1619_s1 }
  0x2d   : > { %s253_s26 = scalar_lea.vmem (!%p1598_p3), [#allocation6], %s1622_s16 }
  0x2e   : > { %1446 = dma.done.wait (%p1559_p8), %s250_s14, 256  }
  0x2f   : > { %1448 = vsyncadd (%p1559_p8), %s250_s14, 4294967040  ;;  %s259_s12 = sand.u32 1, %s1539_s18   ;;  %s263_s20 = scalar_lea.vmem [#allocation9], %s1622_s16 }
  0x30   : > { %s260_s17 = scalar_lea.sflag [#allocation10], %s259_s12 }
  0x31   : > { %1450 = dma.done.wait (%p1559_p8), %s260_s17, 512  }
  0x32   : > { %1452 = vsyncadd (%p1559_p8), %s260_s17, 4294966784  ;;  %v329_v0 = vld [vmem:[%s263_s20] sm:$0xff]  ;;  %v330_v1 = vld [vmem:[%s263_s20 + $0x8] sm:$0xff]  ;;  %vm365_vm0 = vcmask 64512   ;;  %v1484_v20 = vmov -inf   ;;  %v1485_v33 = vmov 0.0  }
  0x33   : > { %333 = vxpose.xlu0.b32.start.end [1/1] (short) %v329_v0, 128  ;;  %v321_v2 = vld [vmem:[%s253_s26] sm:$0xff]  ;;  %v322_v16 = vld [vmem:[%s253_s26 + $0x8] sm:$0xff]  ;;  %315 = vst [vmem:[#allocation2] sm:$0x1] %v1484_v20  ;;  %s273_s18 = scalar_lea.vmem [#allocation11], %s1622_s16  ;;  %s1682_s24 = scalar_lea.vmem [#allocation12], %s1622_s16 }
  0x34   : > { %v323_v3 = vmul.f32 0.35355338, %v321_v2  ;;  %v324_v17 = vmul.f32 0.35355338, %v322_v16  ;;  %316 = vst [vmem:[#allocation2 + $0x1] sm:$0x1] %v1484_v20 }
  0x35   : > { %317 = vst [vmem:[#allocation3] sm:$0x1] %v1485_v33  ;;  %s1200_s27 = sshll.u32 %s1471_s15, 4  ;;  %s1006_s4 = sshll.u32 %s1682_s24, 4  ;;  %s1007_s4 = int_to_ptr.vmem [resolvable:$true] %s1006_s4 }
  0x36   : > { %429 = vmatpush.msra.mxu0 %v323_v3  ;;  %1201 = vmatpush.msra.mxu2 %v323_v3  ;;  %318 = vst [vmem:[#allocation3 + $0x1] sm:$0x1] %v1485_v33  ;;  %s1005_s30 = scalar_lea.hbm %s1728_s3, %s1200_s27  ;;  %s993_s22 = scalar_lea.sflag [#allocation8], %s1619_s1 }
  0x37   : > { %574 = vmatpush.msra.mxu1 %v324_v17  ;;  %1202 = vmatpush.msra.mxu3 %v324_v17  ;;  %s1008_s21 = sshll.u32 %s1005_s30, 4  ;;  %s1413_s8 = scalar_lea.hbm %s1728_s3, 32  ;;  %s1009_s21 = int_to_ptr.hbm [resolvable:$true] %s1008_s21 }
  0x38   : > { %s1407_s23 = sshra.s32 %s1009_s21, 4  ;;  %s1408_s23 = int_to_ptr.hbm [resolvable:$true] %s1407_s23 }
  0x39   : > { %s1409_s15 = scalar_lea.hbm %s1408_s23, 16  ;;  %p1414_p7 = scmp.lt.s32.totalorder %s1408_s23, %s1728_s3 }
  0x3a   : > { %v707_v51 = vld [vmem:[#allocation2] sm:$0x1]  ;;  %p1410_p4 = scmp.ne.s32.totalorder %s1408_s23, %s1409_s15  ;;  %p1415_p8 = scmp.lt.s32.totalorder %s1413_s8, %s1409_s15 }
  0x3c   : > { %v861_v33 = vld [vmem:[#allocation3] sm:$0x1]  ;;  %p1411_p5 = pnand %p1410_p4, %p1563_p9  ;;  %p1416_p10 = por %p1415_p8, %p1414_p7 }
  0x3e   : > { %p1412_p6 = pneg %p1411_p5 }
  0x40   : > { %p1417_p13 = pnand %p1416_p10, %p1412_p6 }
  0xb3   : > { %479 = vxpose.xlu0.b32.start.end [1/1] (short) %v330_v1, 128 }
  0xd7   : > { %v349_v4 = vpop.trf.xlu0 }
  0xd8   : > { %1163 = vmatmul.msk.f32.vlgmr.msra.gmra.mxu0 %vm365_vm0, %v349_v4 }
  0xdf   : > { %v350_v5 = vpop.trf.xlu0 }
  0xe0   : > { %1164 = vmatmul.msk.f32.gmra.mxu0 %vm365_vm0, %v350_v5 }
  0xe7   : > { %v351_v6 = vpop.trf.xlu0 }
  0xe8   : > { %1165 = vmatmul.msk.f32.gmra.mxu0 %vm365_vm0, %v351_v6 }
  0xef   : > { %v352_v7 = vpop.trf.xlu0 }
  0xf0   : > { %1166 = vmatmul.msk.f32.gmra.mxu0 %vm365_vm0, %v352_v7 }
  0xf7   : > { %v353_v8 = vpop.trf.xlu0 }
  0xf8   : > { %1167 = vmatmul.msk.f32.gmra.mxu0 %vm365_vm0, %v353_v8 }
  0xff   : > { %v354_v9 = vpop.trf.xlu0 }
 0x100   : > { %1168 = vmatmul.msk.f32.gmra.mxu0 %vm365_vm0, %v354_v9 }
 0x107   : > { %v355_v10 = vpop.trf.xlu0 }
 0x108   : > { %1169 = vmatmul.msk.f32.gmra.mxu0 %vm365_vm0, %v355_v10 }
 0x10f   : > { %v356_v11 = vpop.trf.xlu0 }
 0x110   : > { %1170 = vmatmul.msk.f32.gmra.mxu0 %vm365_vm0, %v356_v11 }
 0x117   : > { %v357_v12 = vpop.trf.xlu0 }
 0x118   : > { %1171 = vmatmul.msk.f32.gmra.mxu0 %vm365_vm0, %v357_v12 }
 0x11f   : > { %v358_v13 = vpop.trf.xlu0 }
 0x120   : > { %1172 = vmatmul.msk.f32.gmra.mxu0 %vm365_vm0, %v358_v13 }
 0x127   : > { %v359_v14 = vpop.trf.xlu0 }
 0x128   : > { %1173 = vmatmul.msk.f32.vlgmr.msra.gmra.mxu2 %vm365_vm0, %v359_v14 }
 0x12f   : > { %v360_v15 = vpop.trf.xlu0 }
 0x130   : > { %1174 = vmatmul.msk.f32.gmra.mxu2 %vm365_vm0, %v360_v15 }
 0x137   : > { %v361_v18 = vpop.trf.xlu0 }
 0x138   : > { %1175 = vmatmul.msk.f32.gmra.mxu2 %vm365_vm0, %v361_v18 }
 0x13f   : > { %v362_v19 = vpop.trf.xlu0 }
 0x140   : > { %1176 = vmatmul.msk.f32.gmra.mxu2 %vm365_vm0, %v362_v19 }
 0x147   : > { %v363_v21 = vpop.trf.xlu0 }
 0x148   : > { %1177 = vmatmul.msk.f32.gmra.mxu2 %vm365_vm0, %v363_v21 }
 0x14f   : > { %v364_v22 = vpop.trf.xlu0 }
 0x150   : > { %1178 = vmatmul.msk.f32.gmra.mxu2 %vm365_vm0, %v364_v22 }
 0x155   : > { %v431_v23 = vpop.f32.mrf.mxu0 }
 0x156   : > { %v709_v24 = vmax.f32 %v431_v23, -1e+30 }
 0x157   : > { %v495_v25 = vpop.trf.xlu0 }
 0x158   : > { %v711_v26 = vmax.f32 %v709_v24, -1e+30  ;;  %1179 = vmatmul.msk.f32.vlgmr.msra.gmra.mxu1 %vm365_vm0, %v495_v25 }
 0x15a   : > { %v713_v27 = vmax.f32 %v711_v26, -1e+30 }
 0x15c   : > { %v715_v29 = vmax.f32 %v713_v27, -1e+30 }
 0x15d   : > { %v434_v28 = vpop.f32.mrf.mxu0 }
 0x15e   : > { %v710_v30 = vmax.f32 %v434_v28, -1e+30  ;;  %v717_v34 = vmax.f32 %v715_v29, -1e+30 }
 0x15f   : > { %v496_v31 = vpop.trf.xlu0 }
 0x160   : > { %v712_v32 = vmax.f32 %v710_v30, -1e+30  ;;  %1180 = vmatmul.msk.f32.gmra.mxu1 %vm365_vm0, %v496_v31  ;;  %v719_v38 = vmax.f32 %v717_v34, -1e+30 }
 0x162   : > { %v714_v35 = vmax.f32 %v712_v32, -1e+30  ;;  %v721_v41 = vmax.f32 %v719_v38, -1e+30 }
 0x164   : > { %v716_v36 = vmax.f32 %v714_v35, -1e+30 }
 0x165   : > { %v437_v37 = vpop.f32.mrf.mxu0 }
 0x166   : > { %v718_v39 = vmax.f32 %v716_v36, -1e+30 }
 0x167   : > { %v497_v8 = vpop.trf.xlu0 }
 0x168   : > { %v720_v40 = vmax.f32 %v718_v39, -1e+30  ;;  %1181 = vmatmul.msk.f32.gmra.mxu1 %vm365_vm0, %v497_v8 }
 0x16a   : > { %v722_v42 = vmax.f32 %v720_v40, -1e+30 }
 0x16c   : > { %v723_v43 = vmax.f32 %v721_v41, %v722_v42 }
 0x16d   : > { %v440_v44 = vpop.f32.mrf.mxu0 }
 0x16e   : > { %v724_v45 = vrot.slane %v723_v43, 4 }
 0x16f   : > { %v498_v14 = vpop.trf.xlu0 }
 0x170   : > { %v725_v46 = vmax.f32 %v723_v43, %v724_v45  ;;  %1182 = vmatmul.msk.f32.gmra.mxu1 %vm365_vm0, %v498_v14 }
 0x172   : > { %v726_v47 = vrot.slane %v725_v46, 2 }
 0x174   : > { %v727_v48 = vmax.f32 %v725_v46, %v726_v47 }
 0x175   : > { %v443_v49 = vpop.f32.mrf.mxu0 }
 0x176   : > { %v728_v50 = vrot.slane %v727_v48, 1 }
 0x177   : > { %v499_v20 = vpop.trf.xlu0 }
 0x178   : > { %v729_v52 = vmax.f32 %v727_v48, %v728_v50  ;;  %1183 = vmatmul.msk.f32.gmra.mxu1 %vm365_vm0, %v499_v20 }
 0x17a   : > { %v751_v53 = vmax.f32 %v707_v51, %v729_v52 }
 0x17c   : > { %v761_v54 = vperm.slane %v751_v53, 0  ;;  %965 = vst [vmem:[#allocation2] sm:$0x1] %v751_v53  ;;  %v753_v19 = vsub.f32 %v707_v51, %v751_v53 }
 0x17d   : > { %v446_v55 = vpop.f32.mrf.mxu0 }
 0x17e   : > { %v766_v56 = vsub.f32 %v434_v28, %v761_v54  ;;  %v767_v57 = vsub.f32 -1e+30, %v761_v54  ;;  %v765_v58 = vsub.f32 %v431_v23, %v761_v54  ;;  %v331_v23 = vld [vmem:[%s273_s18] sm:$0xff]  ;;  %v755_v24 = vmul.f32 1.442695, %v753_v19 }
 0x17f   : > { %v500_v28 = vpop.trf.xlu0 }
 0x180   : > { %v799_v59 = vmul.f32 1.442695, %v766_v56  ;;  %v801_v60 = vmul.f32 1.442695, %v767_v57  ;;  %v797_v61 = vmul.f32 1.442695, %v765_v58  ;;  %1184 = vmatmul.msk.f32.gmra.mxu1 %vm365_vm0, %v500_v28 }
 0x182   : > { %1283 = vpow2.f32 %v799_v59 }
 0x183   : > { %1285 = vpow2.f32 %v801_v60 }
 0x184   : > { %1287 = vpow2.f32 %v797_v61 }
 0x185   : > { %v449_v62 = vpop.f32.mrf.mxu0  ;;  %1289 = vpow2.f32 %v755_v24 }
 0x187   : > { %v501_v39 = vpop.trf.xlu0 }
 0x188   : > { %v1284_v63 = vpop.eup %1283  ;;  %1185 = vmatmul.msk.f32.gmra.mxu1 %vm365_vm0, %v501_v39 }
 0x189   : > { %v1286_v0 = vpop.eup %1285 }
 0x18a   : > { %v1288_v1 = vpop.eup %1287  ;;  %911 = vmatpush.msrb.mxu2 %v1286_v0 }
 0x18b   : > { %v865_v2 = vadd.f32 %v1288_v1, %v1284_v63  ;;  %v1665_v32 = vpop.eup %1289 }
 0x18c   : > { %912 = vmatpush.msrb.mxu2 %v1286_v0  ;;  %v863_v36 = vmul.f32 %v1665_v32, %v861_v33 }
 0x18d   : > { %v452_v3 = vpop.f32.mrf.mxu0  ;;  %v866_v4 = vadd.f32 %v1286_v0, %v865_v2 }
 0x18e   : > { %913 = vmatpush.msrb.mxu2 %v1286_v0 }
 0x18f   : > { %v867_v5 = vadd.f32 %v1286_v0, %v866_v4  ;;  %v502_v41 = vpop.trf.xlu0 }
 0x190   : > { %914 = vmatpush.msrb.mxu2 %v1286_v0  ;;  %1186 = vmatmul.msk.f32.gmra.mxu1 %vm365_vm0, %v502_v41 }
 0x191   : > { %v868_v6 = vadd.f32 %v1286_v0, %v867_v5 }
 0x192   : > { %915 = vmatpush.msrb.mxu2 %v1286_v0 }
 0x193   : > { %v869_v7 = vadd.f32 %v1286_v0, %v868_v6 }
 0x194   : > { %916 = vmatpush.msrb.mxu2 %v1286_v0 }
 0x195   : > { %v455_v9 = vpop.f32.mrf.mxu0  ;;  %v870_v10 = vadd.f32 %v1286_v0, %v869_v7 }
 0x196   : > { %917 = vmatpush.msrb.mxu2 %v1286_v0  ;;  %v708_v9 = vld [vmem:[#allocation2 + $0x1] sm:$0x1] }
 0x197   : > { %v871_v11 = vadd.f32 %v1286_v0, %v870_v10  ;;  %v503_v43 = vpop.trf.xlu0 }
 0x198   : > { %918 = vmatpush.msrb.mxu2 %v1286_v0  ;;  %1187 = vmatmul.msk.f32.gmra.mxu1 %vm365_vm0, %v503_v43 }
 0x199   : > { %v872_v12 = vadd.f32 %v1286_v0, %v871_v11 }
 0x19a   : > { %919 = vmatpush.msrb.mxu2 %v1286_v0 }
 0x19b   : > { %v873_v13 = vadd.f32 %v1286_v0, %v872_v12 }
 0x19c   : > { %920 = vmatpush.msrb.mxu2 %v1286_v0 }
 0x19d   : > { %v458_v15 = vpop.f32.mrf.mxu0  ;;  %v874_v16 = vadd.f32 %v1286_v0, %v873_v13 }
 0x19e   : > { %921 = vmatpush.msrb.mxu2 %v1286_v0 }
 0x19f   : > { %v875_v17 = vadd.f32 %v1286_v0, %v874_v16  ;;  %v504_v45 = vpop.trf.xlu0 }
 0x1a0   : > { %922 = vmatpush.msrb.mxu2 %v1286_v0  ;;  %1188 = vmatmul.msk.f32.vlgmr.msra.gmra.mxu3 %vm365_vm0, %v504_v45 }
 0x1a1   : > { %v876_v18 = vadd.f32 %v1286_v0, %v875_v17 }
 0x1a2   : > { %923 = vmatpush.msrb.mxu2 %v1286_v0 }
 0x1a3   : > { %v877_v21 = vadd.f32 %v1286_v0, %v876_v18 }
 0x1a4   : > { %924 = vmatpush.msrb.mxu2 %v1286_v0 }
 0x1a5   : > { %v878_v22 = vadd.f32 %v1286_v0, %v877_v21 }
 0x1a6   : > { %925 = vmatpush.msrb.mxu2 %v1284_v63 }
 0x1a7   : > { %v879_v25 = vadd.f32 %v1286_v0, %v878_v22  ;;  %v505_v50 = vpop.trf.xlu0 }
 0x1a8   : > { %926 = vmatpush.msrb.mxu2 %v1288_v1  ;;  %1189 = vmatmul.msk.f32.gmra.mxu3 %vm365_vm0, %v505_v50 }
 0x1a9   : > { %927 = vmatmul.f32.vlgmr.msrb.gmra.mxu2 %v331_v23  ;;  %v880_v26 = vrot.slane %v879_v25, 4 }
 0x1ab   : > { %v461_v27 = vpop.f32.mrf.mxu2  ;;  %v881_v29 = vadd.f32 %v880_v26, %v879_v25 }
 0x1ad   : > { %v882_v30 = vrot.slane %v881_v29, 2 }
 0x1af   : > { %v883_v31 = vadd.f32 %v882_v30, %v881_v29  ;;  %v506_v56 = vpop.trf.xlu0 }
 0x1b0   : > { %1190 = vmatmul.msk.f32.gmra.mxu3 %vm365_vm0, %v506_v56 }
 0x1b1   : > { %v884_v34 = vrot.slane %v883_v31, 1 }
 0x1b3   : > { %v464_v35 = vpop.f32.mrf.mxu2  ;;  %v885_v37 = vadd.f32 %v884_v34, %v883_v31 }
 0x1b5   : > { %v907_v38 = vadd.f32 %v885_v37, %v863_v36 }
 0x1b7   : > { %909 = vst [vmem:[#allocation3] sm:$0x1] %v907_v38  ;;  %v507_v63 = vpop.trf.xlu0 }
 0x1b8   : > { %1191 = vmatmul.msk.f32.gmra.mxu3 %vm365_vm0, %v507_v63  ;;  %v862_v63 = vld [vmem:[#allocation3 + $0x1] sm:$0x1] }
 0x1bb   : > { %v467_v40 = vpop.f32.mrf.mxu2 }
 0x1be   : > { %v970_v31 = vld [vmem:[#allocation3] sm:$0x1] }
 0x1bf   : > { %v508_v5 = vpop.trf.xlu0 }
 0x1c0   : > { %1192 = vmatmul.msk.f32.gmra.mxu3 %vm365_vm0, %v508_v5 }
 0x1c3   : > { %v470_v42 = vpop.f32.mrf.mxu2 }
 0x1c7   : > { %v509_v11 = vpop.trf.xlu0 }
 0x1c8   : > { %1193 = vmatmul.msk.f32.gmra.mxu3 %vm365_vm0, %v509_v11 }
 0x1cb   : > { %v473_v44 = vpop.f32.mrf.mxu2 }
 0x1cf   : > { %v510_v20 = vpop.trf.xlu0 }
 0x1d0   : > { %1194 = vmatmul.msk.f32.gmra.mxu3 %vm365_vm0, %v510_v20 }
 0x1d3   : > { %v476_v46 = vpop.f32.mrf.mxu2 }
 0x1d5   : > { %v576_v47 = vpop.f32.mrf.mxu1 }
 0x1d6   : > { %v730_v48 = vmax.f32 %v576_v47, -1e+30 }
 0x1d8   : > { %v732_v49 = vmax.f32 %v730_v48, -1e+30 }
 0x1da   : > { %v734_v51 = vmax.f32 %v732_v49, -1e+30  ;;  %v955_v49 = vperm.slane %v1665_v32, 0 }
 0x1dc   : > { %v736_v53 = vmax.f32 %v734_v51, -1e+30 }
 0x1dd   : > { %v579_v52 = vpop.f32.mrf.mxu1 }
 0x1de   : > { %v731_v54 = vmax.f32 %v579_v52, -1e+30  ;;  %v738_v57 = vmax.f32 %v736_v53, -1e+30 }
 0x1e0   : > { %v733_v55 = vmax.f32 %v731_v54, -1e+30  ;;  %v740_v60 = vmax.f32 %v738_v57, -1e+30  ;;  %v959_v54 = vmul.f32 0.0, %v955_v49 }
 0x1e2   : > { %v735_v58 = vmax.f32 %v733_v55, -1e+30  ;;  %v742_v0 = vmax.f32 %v740_v60, -1e+30 }
 0x1e4   : > { %v737_v59 = vmax.f32 %v735_v58, -1e+30 }
 0x1e5   : > { %v582_v28 = vpop.f32.mrf.mxu1 }
 0x1e6   : > { %v739_v61 = vmax.f32 %v737_v59, -1e+30 }
 0x1e8   : > { %v741_v62 = vmax.f32 %v739_v61, -1e+30 }
 0x1ea   : > { %v743_v1 = vmax.f32 %v741_v62, -1e+30 }
 0x1ec   : > { %v744_v2 = vmax.f32 %v742_v0, %v743_v1 }
 0x1ed   : > { %v585_v35 = vpop.f32.mrf.mxu1 }
 0x1ee   : > { %v745_v3 = vrot.slane %v744_v2, 4 }
 0x1f0   : > { %v746_v4 = vmax.f32 %v744_v2, %v745_v3 }
 0x1f2   : > { %v747_v6 = vrot.slane %v746_v4, 2 }
 0x1f4   : > { %v748_v7 = vmax.f32 %v746_v4, %v747_v6 }
 0x1f5   : > { %v588_v41 = vpop.f32.mrf.mxu1 }
 0x1f6   : > { %v749_v8 = vrot.slane %v748_v7, 1 }
 0x1f8   : > { %v750_v10 = vmax.f32 %v748_v7, %v749_v8 }
 0x1fa   : > { %v752_v12 = vmax.f32 %v708_v9, %v750_v10 }
 0x1fc   : > { %v762_v13 = vperm.slane %v752_v12, 0  ;;  %966 = vst [vmem:[#allocation2 + $0x1] sm:$0x1] %v752_v12  ;;  %v754_v43 = vsub.f32 %v708_v9, %v752_v12 }
 0x1fe   : > { %v782_v14 = vsub.f32 %v579_v52, %v762_v13  ;;  %v783_v15 = vsub.f32 -1e+30, %v762_v13  ;;  %v781_v16 = vsub.f32 %v576_v47, %v762_v13  ;;  %v332_v47 = vld [vmem:[%s273_s18 + $0x8] sm:$0xff]  ;;  %v757_v48 = vmul.f32 1.442695, %v754_v43  ;;  %v591_v52 = vpop.f32.mrf.mxu1 }
 0x200   : > { %v831_v17 = vmul.f32 1.442695, %v782_v14  ;;  %v833_v18 = vmul.f32 1.442695, %v783_v15  ;;  %v829_v19 = vmul.f32 1.442695, %v781_v16 }
 0x202   : > { %1291 = vpow2.f32 %v831_v17 }
 0x203   : > { %1293 = vpow2.f32 %v833_v18 }
 0x204   : > { %1295 = vpow2.f32 %v829_v19 }
 0x205   : > { %1297 = vrcp.f32 %v970_v31 }
 0x206   : > { %1299 = vpow2.f32 %v757_v48  ;;  %v594_v3 = vpop.f32.mrf.mxu1 }
 0x208   : > { %v1292_v21 = vpop.eup %1291 }
 0x209   : > { %v1294_v22 = vpop.eup %1293 }
 0x20a   : > { %v1296_v23 = vpop.eup %1295  ;;  %931 = vmatpush.msrb.mxu3 %v1294_v22 }
 0x20b   : > { %v886_v24 = vadd.f32 %v1296_v23, %v1292_v21  ;;  %v1298_v38 = vpop.eup %1297 }
 0x20c   : > { %932 = vmatpush.msrb.mxu3 %v1294_v22  ;;  %v974_v40 = vmul.f32 %v1298_v38, %v970_v31  ;;  %v1300_v62 = vpop.eup %1299 }
 0x20d   : > { %v887_v25 = vadd.f32 %v1294_v22, %v886_v24  ;;  %v864_v0 = vmul.f32 %v1300_v62, %v862_v63  ;;  %v956_v17 = vperm.slane %v1300_v62, 0 }
 0x20e   : > { %933 = vmatpush.msrb.mxu3 %v1294_v22  ;;  %v976_v45 = vsub.f32 2.0, %v974_v40  ;;  %v597_v4 = vpop.f32.mrf.mxu1 }
 0x20f   : > { %v888_v26 = vadd.f32 %v1294_v22, %v887_v25  ;;  %v960_v19 = vmul.f32 0.0, %v956_v17 }
 0x210   : > { %934 = vmatpush.msrb.mxu3 %v1294_v22  ;;  %v978_v51 = vmul.f32 %v1298_v38, %v976_v45 }
 0x211   : > { %v889_v27 = vadd.f32 %v1294_v22, %v888_v26 }
 0x212   : > { %935 = vmatpush.msrb.mxu3 %v1294_v22  ;;  %v984_v58 = vperm.slane %v978_v51, 0 }
 0x213   : > { %v890_v29 = vadd.f32 %v1294_v22, %v889_v27 }
 0x214   : > { %936 = vmatpush.msrb.mxu3 %v1294_v22 }
 0x215   : > { %v891_v30 = vadd.f32 %v1294_v22, %v890_v29 }
 0x216   : > { %937 = vmatpush.msrb.mxu3 %v1294_v22  ;;  %v600_v5 = vpop.f32.mrf.mxu1 }
 0x217   : > { %v892_v33 = vadd.f32 %v1294_v22, %v891_v30 }
 0x218   : > { %938 = vmatpush.msrb.mxu3 %v1294_v22 }
 0x219   : > { %v893_v34 = vadd.f32 %v1294_v22, %v892_v33 }
 0x21a   : > { %939 = vmatpush.msrb.mxu3 %v1294_v22 }
 0x21b   : > { %v894_v36 = vadd.f32 %v1294_v22, %v893_v34 }
 0x21c   : > { %940 = vmatpush.msrb.mxu3 %v1294_v22 }
 0x21d   : > { %v895_v37 = vadd.f32 %v1294_v22, %v894_v36 }
 0x21e   : > { %941 = vmatpush.msrb.mxu3 %v1294_v22 }
 0x21f   : > { %v896_v39 = vadd.f32 %v1294_v22, %v895_v37 }
 0x220   : > { %942 = vmatpush.msrb.mxu3 %v1294_v22 }
 0x221   : > { %v897_v42 = vadd.f32 %v1294_v22, %v896_v39 }
 0x222   : > { %943 = vmatpush.msrb.mxu3 %v1294_v22 }
 0x223   : > { %v898_v44 = vadd.f32 %v1294_v22, %v897_v42  ;;  %v603_v6 = vpop.f32.mrf.mxu3 }
 0x224   : > { %944 = vmatpush.msrb.mxu3 %v1294_v22 }
 0x225   : > { %v899_v46 = vadd.f32 %v1294_v22, %v898_v44 }
 0x226   : > { %945 = vmatpush.msrb.mxu3 %v1292_v21 }
 0x227   : > { %v900_v50 = vadd.f32 %v1294_v22, %v899_v46 }
 0x228   : > { %946 = vmatpush.msrb.mxu3 %v1296_v23 }
 0x229   : > { %947 = vmatmul.f32.vlgmr.msrb.gmra.mxu3 %v332_v47  ;;  %v901_v53 = vrot.slane %v900_v50, 4 }
 0x22b   : > { %v902_v55 = vadd.f32 %v901_v53, %v900_v50  ;;  %v606_v7 = vpop.f32.mrf.mxu3 }
 0x22c   : > { %v928_v56 = vpop.f32.mrf.mxu2 }
 0x22d   : > { %v961_v57 = vadd.f32 %v959_v54, %v928_v56  ;;  %v903_v59 = vrot.slane %v902_v55, 2 }
 0x22f   : > { %v988_v60 = vmul.f32 %v984_v58, %v961_v57  ;;  %v904_v61 = vadd.f32 %v903_v59, %v902_v55 }
 0x231   : > { %990 = vst [vmem:[%s1682_s24] sm:$0xff] %v988_v60  ;;  %v905_v32 = vrot.slane %v904_v61, 1 }
 0x233   : > { %v906_v1 = vadd.f32 %v905_v32, %v904_v61  ;;  %v609_v8 = vpop.f32.mrf.mxu3 }
 0x235   : > { %v908_v2 = vadd.f32 %v906_v1, %v864_v0 }
 0x237   : > { %910 = vst [vmem:[#allocation3 + $0x1] sm:$0x1] %v908_v2 }
 0x23b   : > { %v612_v9 = vpop.f32.mrf.mxu3 }
 0x23e   : > { %v971_v13 = vld [vmem:[#allocation3 + $0x1] sm:$0x1] }
 0x23f   : > { %1301 = vrcp.f32 %v971_v13 }
 0x243   : > { %v615_v10 = vpop.f32.mrf.mxu3 }
 0x245   : > { %v1302_v14 = vpop.eup %1301 }
 0x246   : > { %v975_v15 = vmul.f32 %v1302_v14, %v971_v13 }
 0x248   : > { %v977_v16 = vsub.f32 2.0, %v975_v15 }
 0x24a   : > { %v979_v18 = vmul.f32 %v1302_v14, %v977_v16 }
 0x24b   : > { %v618_v11 = vpop.f32.mrf.mxu3 }
 0x24c   : > { %v985_v22 = vperm.slane %v979_v18, 0 }
 0x253   : > { %v621_v12 = vpop.f32.mrf.mxu3 }
 0x2ac   : > { %v948_v20 = vpop.f32.mrf.mxu3 }
 0x2ad   : > { %v962_v21 = vadd.f32 %v960_v19, %v948_v20 }
 0x2af   : > { %v989_v23 = vmul.f32 %v985_v22, %v962_v21 }
 0x2b1   : > { %991 = vst [vmem:[%s1682_s24 + $0x8] sm:$0xff] %v989_v23 }
 0x2b2   : > { %1420 = shalt.err (!%p1417_p13)
}
 0x2b3   : > { %s1486_s5 = smov 128   ;;  %s1487_s10 = smov 8  }
 0x2b4   : > { %1210 = dma.vmem_to_hbm [thread:$0]  (%p1563_p9), %s1007_s4, 256, %s1009_s21, %s993_s22, %s1486_s5, %s1486_s5, %s1487_s10  }
 0x2b5 PF: > { %s1751_s19 = sld [smem:[#allocation16_spill]]  ;;  %p1223_p0 = pnand %p1149_p12, %p1570_p11 }
 0x2b6   : > { %s1753_s16 = sld [smem:[#allocation19_spill]] }
 0x2b7   : > { %p1224_p1 = pneg %p1223_p0 }
 0x2bb   : > { %s1023_s14 = sand.u32 1, %s1751_s19  }
 0x2bc   : > { %s1024_s26 = scalar_lea.sflag [#allocation8], %s1023_s14 }
 0x2bd   : > { %1454 = dma.done.wait (%p1224_p1), %s1024_s26, 256  }
 0x2be   : > { %1456 = vsyncadd (%p1224_p1), %s1024_s26, 4294967040  ;;  %s22_s17 = sadd.s32 1, %s1753_s16   ;;  %s1754_s20 = sld [smem:[#allocation17_spill]] }
 0x2bf   : > { %p19_p2 = scmp.ge.s32.totalorder %s22_s17, 4   ;;  %s1755_s14 = sld [smem:[#allocation21_spill]] }
 0x2c0   : > { %s1756_s15 = sld [smem:[#allocation18_spill]]  ;;  %s1758_s12 = smov %s1463_s13 }
 0x2c1   : > { %s1757_s16 = sld [smem:[#allocation20_spill]]  ;;  %21 = sbr.rel (!%p19_p2) target bundleno = 10 (0xa), region = 109 }
 0x2c4   : > { %s1759_s13 = smov %s1754_s20 }
 0x2c6   :  { %1030 = vsyncpa [#allocation7], 1 }
 0x2c7   :  { %1032 = vsyncpa [#allocation7 + $0x1], 1 }
 0x2c8   :  { %1033 = vsyncpa [#allocation10], 1 }
 0x2c9   :  { %1035 = vsyncpa [#allocation10 + $0x1], 1 }
 0x2ca   :  { %1036 = vsyncpa [#allocation8], 1 }
 0x2cb   :  { %1038 = vsyncpa [#allocation8 + $0x1], 1 }

</bundles_post_ra>
